<compile_context>
chip_gen: v7x
topology: tpu7x:2x2x1
jax: 0.10.0
libtpu: 0.0.40
codegen_flags: <defaults>
</compile_context>

<pallas_src>
import functools
from typing import NamedTuple, Tuple

import numpy as np

import jax
import jax.numpy as jnp
from jax.experimental import pallas as pl
from jax.experimental.pallas import tpu as pltpu


# -----------------------------------------------------------------------------
# Static layout of the packed parameter buffer (hashable -> usable as a static
# jit argument).
# -----------------------------------------------------------------------------
class Layout(NamedTuple):
    weight_blocks: Tuple[Tuple[int, int], ...]  # per layer: (row_offset, k_rows)
    bias_row: int                               # bias for layer i lives at row bias_row + i
    dim_out: int                                # true (unpadded) output feature dim
    lane: int                                   # padded feature width (multiple of 128)


_APPROX_RECIPROCAL = True   # flip to False for bit-level sigmoid parity
_MAX_TM = 256               # batch-rows per grid step once M outgrows one tile


def _round_up(n, m):
    return ((n + m - 1) // m) * m


def _sigmoid(y):
    # 1 / (1 + exp(-y)) : exp and the (approximate) reciprocal both execute on
    # the EUP slot, keeping the serial MXU -> EUP chain off the VPU divider.
    return pl.reciprocal(1.0 + jnp.exp(-y), approx=_APPROX_RECIPROCAL)


# -----------------------------------------------------------------------------
# Fused kernel: the whole MLP in one invocation.  Intermediate activations
# never touch HBM — they live in vregs/VMEM; only the final (TM, dim_out) tile
# is stored.
# -----------------------------------------------------------------------------
def _fused_mlp_kernel(x_ref, p_ref, o_ref, *, layout):
    x = x_ref[...]                                            # (TM, K0) f32
    for i, (row, k) in enumerate(layout.weight_blocks):
        w = p_ref[row:row + k, :]                             # (k, lane) static view
        b = p_ref[layout.bias_row + i:layout.bias_row + i + 1, :]   # (1, lane)
        y = jnp.dot(x, w, preferred_element_type=jnp.float32) + b
        x = _sigmoid(y)                                       # (TM, lane) lane-dense
        # lane-padding cols are sigmoid(0)=0.5 and hit zeroed rows of the next
        # padded weight block, so they contribute nothing.
    x = _sigmoid(x)                                           # trailing sigmoid (matches PyTorch)
    o_ref[...] = x[:, :layout.dim_out].astype(o_ref.dtype)


# -----------------------------------------------------------------------------
# Forward wrapper.  jitted once per (shape, layout).
# -----------------------------------------------------------------------------
@functools.partial(jax.jit, static_argnames=("layout",))
def linear_model_forward(packed, x, *, layout):
    M, K0 = x.shape
    dim_out = layout.dim_out
    lane = layout.lane
    n_layers = len(layout.weight_blocks)

    kernel = functools.partial(_fused_mlp_kernel, layout=layout)

    TM = M if M <= _MAX_TM else _MAX_TM
    grid_m = pl.cdiv(M, TM)
    M_pad = grid_m * TM
    x_in = x if M_pad == M else jnp.pad(x, ((0, M_pad - M), (0, 0)))

    # Advisory cost estimate (near-zero at toy sizes) so XLA schedules sanely.
    flops = sum(2 * M_pad * k * lane + M_pad * lane for (_, k) in layout.weight_blocks)
    cost = pl.CostEstimate(
        flops=int(flops),
        transcendentals=int(M_pad * lane * (n_layers + 1)),
        bytes_accessed=int(4 * (M_pad * K0 + packed.shape[0] * packed.shape[1]
                                + M_pad * dim_out)),
    )
    out_shape = jax.ShapeDtypeStruct((M_pad, dim_out), x.dtype)

    if grid_m == 1:
        # Tiny-batch path: no grid, no pipelining machinery, one DMA per
        # operand (and there are only 2 operands thanks to the packed buffer).
        vmem = pl.BlockSpec(memory_space=pltpu.MemorySpace.VMEM)
        out = pl.pallas_call(
            kernel,
            out_shape=out_shape,
            in_specs=[vmem, vmem],
            out_specs=vmem,
            cost_estimate=cost,
        )(x_in, packed)
    else:
        # Large-batch path: tile the batch; weights stay resident (constant
        # index_map); "parallel" lets v7x's two TensorCores split the rows.
        out = pl.pallas_call(
            kernel,
            out_shape=out_shape,
            grid=(grid_m,),
            in_specs=[
                pl.BlockSpec((TM, K0), lambda i: (i, 0)),
                pl.BlockSpec(packed.shape, lambda i: (0, 0)),
            ],
            out_specs=pl.BlockSpec((TM, dim_out), lambda i: (i, 0)),
            compiler_params=pltpu.CompilerParams(
                dimension_semantics=("parallel",)),
            cost_estimate=cost,
        )(x_in, packed)

    return out if M_pad == M else out[:M]


# -----------------------------------------------------------------------------
# Parameter init (plain-JAX glue), mimicking nn.Linear's U(-1/sqrt(fan_in), ..).
# Weights stored transposed (in, out) so the kernel does x @ W directly.
# -----------------------------------------------------------------------------
def init_linear_model_params(key, dim_in, dim_hidden, dim_out):
    dims = [dim_in] + list(dim_hidden) + [dim_out]
    params = []
    for i in range(len(dims) - 1):
        fan_in, fan_out = dims[i], dims[i + 1]
        key, kw, kb = jax.random.split(key, 3)
        bound = 1.0 / float(fan_in) ** 0.5
        w = jax.random.uniform(kw, (fan_in, fan_out), jnp.float32, -bound, bound)
        b = jax.random.uniform(kb, (fan_out,), jnp.float32, -bound, bound)
        params.append((w, b))
    return params


def pack_linear_params(params):
    """Pack per-layer (W (K,N), b (N,)) into one lane-padded (R, lane) f32 buffer.

    Layout (rows, lane=round_up(max N, 128)):
      [W0 : dim_in rows (block padded to mult. of 8)]
      [W1 : lane rows (rows >= N0 zero, cols >= N1 zero)]
      ...
      [bias block : row (bias_row + i) holds layer-i bias, cols >= N_i zero]
    """
    n_layers = len(params)
    dim_in = int(params[0][0].shape[0])
    outs = [int(w.shape[1]) for (w, _) in params]
    lane = _round_up(max(outs), 128)

    blk_rows = [_round_up(dim_in, 8)] + [lane] * (n_layers - 1)
    row_off = [0]
    for r in blk_rows[:-1]:
        row_off.append(row_off[-1] + r)
    bias_row = row_off[-1] + blk_rows[-1]
    total_rows = bias_row + _round_up(n_layers, 8)

    buf = np.zeros((total_rows, lane), np.float32)
    for i, (w, b) in enumerate(params):
        w = np.asarray(w, np.float32)
        b = np.asarray(b, np.float32).reshape(-1)
        K, N = w.shape
        buf[row_off[i]:row_off[i] + K, :N] = w
        buf[bias_row + i, :N] = b

    weight_blocks = tuple(
        (int(row_off[i]), int(dim_in if i == 0 else lane)) for i in range(n_layers))
    layout = Layout(weight_blocks=weight_blocks,
                    bias_row=int(bias_row),
                    dim_out=int(outs[-1]),
                    lane=int(lane))
    return jnp.asarray(buf), layout


def linear_model_reference(params, x):
    """Pure-JAX reference matching the PyTorch forward (incl. double sigmoid)."""
    for (w, b) in params:
        x = jax.nn.sigmoid(x @ w + b)
    return jax.nn.sigmoid(x)


# -----------------------------------------------------------------------------
if __name__ == "__main__":
    batch = 8
    dim_in = 32
    dim_hidden = [64, 48]
    dim_out = 16

    key = jax.random.PRNGKey(0)
    key, kx = jax.random.split(key)
    x = jax.random.normal(kx, (batch, dim_in), jnp.float32)

    params = init_linear_model_params(key, dim_in, dim_hidden, dim_out)
    packed, layout = pack_linear_params(params)

    # Tolerance is loosened slightly to accommodate the EUP approximate
    # reciprocal inside the in-kernel sigmoid (set _APPROX_RECIPROCAL=False
    # for tight parity).
    TOL = 5e-3

    # Small-batch (grid=()) fully fused path.
    out = linear_model_forward(packed, x, layout=layout)
    out = jax.block_until_ready(out)
    ref = linear_model_reference(params, x)
    assert out.shape == (batch, dim_out), out.shape
    assert jnp.allclose(out, ref, atol=TOL, rtol=TOL), "mismatch vs reference (small batch)"

    # Larger batch exercises the gridded / megacore ("parallel") path.
    xb = jax.random.normal(jax.random.PRNGKey(1), (512, dim_in), jnp.float32)
    outb = jax.block_until_ready(linear_model_forward(packed, xb, layout=layout))
    refb = linear_model_reference(params, xb)
    assert outb.shape == (512, dim_out), outb.shape
    assert jnp.allclose(outb, refb, atol=TOL, rtol=TOL), "mismatch vs reference (large batch)"

    print("KERNEL_OK")
</pallas_src>

<mosaic_0001>
module attributes {stable_mosaic.version = 11 : i64} {
  func.func @_fused_mlp_kernel(%arg0: memref<8x32xf32, #tpu.memory_space<vmem>>, %arg1: memref<296x128xf32, #tpu.memory_space<vmem>>, %arg2: memref<8x16xf32, #tpu.memory_space<vmem>>) attributes {dimension_semantics = [], scalar_prefetch = 0 : i64, scratch_operands = 0 : i64, tpu.core_type = #tpu.core_type<tc>} {
    %c0 = arith.constant 0 : index
    %c0_0 = arith.constant 0 : index
    %0 = vector.load %arg0[%c0, %c0_0] : memref<8x32xf32, #tpu.memory_space<vmem>>, vector<8x32xf32>
    %c0_1 = arith.constant 0 : index
    %c0_2 = arith.constant 0 : index
    %1 = vector.load %arg1[%c0_1, %c0_2] : memref<296x128xf32, #tpu.memory_space<vmem>>, vector<32x128xf32>
    %c288 = arith.constant 288 : index
    %c0_3 = arith.constant 0 : index
    %2 = vector.load %arg1[%c288, %c0_3] : memref<296x128xf32, #tpu.memory_space<vmem>>, vector<1x128xf32>
    %cst = arith.constant dense<0.000000e+00> : vector<8x128xf32>
    %3 = tpu.matmul %0, %1, %cst {dimension_numbers = #tpu.dot_dimension_numbers<[1], [0], [0], [1], [0, 0, 1, 1], [], []>} : vector<8x32xf32>, vector<32x128xf32>, vector<8x128xf32> -> vector<8x128xf32>
    %4 = vector.broadcast %2 : vector<1x128xf32> to vector<8x128xf32>
    %5 = arith.addf %3, %4 : vector<8x128xf32>
    %cst_4 = arith.constant 0.000000e+00 : f32
    %6 = vector.broadcast %cst_4 : f32 to vector<8x128xf32>
    %7 = arith.subf %6, %5 : vector<8x128xf32>
    %8 = math.exp %7 : vector<8x128xf32>
    %cst_5 = arith.constant 1.000000e+00 : f32
    %9 = vector.broadcast %cst_5 : f32 to vector<8x128xf32>
    %10 = arith.addf %9, %8 : vector<8x128xf32>
    %11 = tpu.reciprocal %10 {approx = true} : vector<8x128xf32> -> vector<8x128xf32>
    %c32 = arith.constant 32 : index
    %c0_6 = arith.constant 0 : index
    %12 = vector.load %arg1[%c32, %c0_6] : memref<296x128xf32, #tpu.memory_space<vmem>>, vector<128x128xf32>
    %c289 = arith.constant 289 : index
    %c0_7 = arith.constant 0 : index
    %13 = vector.load %arg1[%c289, %c0_7] : memref<296x128xf32, #tpu.memory_space<vmem>>, vector<1x128xf32>
    %cst_8 = arith.constant dense<0.000000e+00> : vector<8x128xf32>
    %14 = tpu.matmul %11, %12, %cst_8 {dimension_numbers = #tpu.dot_dimension_numbers<[1], [0], [0], [1], [0, 0, 1, 1], [], []>} : vector<8x128xf32>, vector<128x128xf32>, vector<8x128xf32> -> vector<8x128xf32>
    %15 = vector.broadcast %13 : vector<1x128xf32> to vector<8x128xf32>
    %16 = arith.addf %14, %15 : vector<8x128xf32>
    %cst_9 = arith.constant 0.000000e+00 : f32
    %17 = vector.broadcast %cst_9 : f32 to vector<8x128xf32>
    %18 = arith.subf %17, %16 : vector<8x128xf32>
    %19 = math.exp %18 : vector<8x128xf32>
    %cst_10 = arith.constant 1.000000e+00 : f32
    %20 = vector.broadcast %cst_10 : f32 to vector<8x128xf32>
    %21 = arith.addf %20, %19 : vector<8x128xf32>
    %22 = tpu.reciprocal %21 {approx = true} : vector<8x128xf32> -> vector<8x128xf32>
    %c160 = arith.constant 160 : index
    %c0_11 = arith.constant 0 : index
    %23 = vector.load %arg1[%c160, %c0_11] : memref<296x128xf32, #tpu.memory_space<vmem>>, vector<128x128xf32>
    %c290 = arith.constant 290 : index
    %c0_12 = arith.constant 0 : index
    %24 = vector.load %arg1[%c290, %c0_12] : memref<296x128xf32, #tpu.memory_space<vmem>>, vector<1x128xf32>
    %cst_13 = arith.constant dense<0.000000e+00> : vector<8x128xf32>
    %25 = tpu.matmul %22, %23, %cst_13 {dimension_numbers = #tpu.dot_dimension_numbers<[1], [0], [0], [1], [0, 0, 1, 1], [], []>} : vector<8x128xf32>, vector<128x128xf32>, vector<8x128xf32> -> vector<8x128xf32>
    %26 = vector.broadcast %24 : vector<1x128xf32> to vector<8x128xf32>
    %27 = arith.addf %25, %26 : vector<8x128xf32>
    %cst_14 = arith.constant 0.000000e+00 : f32
    %28 = vector.broadcast %cst_14 : f32 to vector<8x128xf32>
    %29 = arith.subf %28, %27 : vector<8x128xf32>
    %30 = math.exp %29 : vector<8x128xf32>
    %cst_15 = arith.constant 1.000000e+00 : f32
    %31 = vector.broadcast %cst_15 : f32 to vector<8x128xf32>
    %32 = arith.addf %31, %30 : vector<8x128xf32>
    %33 = tpu.reciprocal %32 {approx = true} : vector<8x128xf32> -> vector<8x128xf32>
    %cst_16 = arith.constant 0.000000e+00 : f32
    %34 = vector.broadcast %cst_16 : f32 to vector<8x128xf32>
    %35 = arith.subf %34, %33 : vector<8x128xf32>
    %36 = math.exp %35 : vector<8x128xf32>
    %cst_17 = arith.constant 1.000000e+00 : f32
    %37 = vector.broadcast %cst_17 : f32 to vector<8x128xf32>
    %38 = arith.addf %37, %36 : vector<8x128xf32>
    %39 = tpu.reciprocal %38 {approx = true} : vector<8x128xf32> -> vector<8x128xf32>
    %40 = vector.extract_strided_slice %39 {offsets = [0, 0], sizes = [8, 16], strides = [1, 1]} : vector<8x128xf32> to vector<8x16xf32>
    %c0_18 = arith.constant 0 : index
    %c0_19 = arith.constant 0 : index
    %41 = vector.load %arg2[%c0_18, %c0_19] : memref<8x16xf32, #tpu.memory_space<vmem>>, vector<8x16xf32>
    tpu.vector_store %arg2[%c0_18, %c0_19], %40 {strides = array<i32>} : memref<8x16xf32, #tpu.memory_space<vmem>>, vector<8x16xf32>,
    return
  }
}

</mosaic_0001>

<bundles_post_ra>
// kernel: linear_model_forward.1
= control target key start
LH: loop header
LB: loop body
LE: loop exit
PB: predicated region body
PF: predicated region fallthrough
CT: control target
= control target key end

     0   :  { %7 = vsyncpa [#allocation3], 0  ;;  %s703_s0 = inlined_call_operand.hbm [shape: f32[8,32], index: 0, kind: input, shape index: {}]   ;;  %s704_s1 = inlined_call_operand.hbm [shape: f32[296,128], index: 1, kind: input, shape index: {}]   ;;  %s705_s2 = inlined_call_operand.hbm [shape: f32[8,16], index: 2, kind: output, shape index: {}]  }
   0x1   :  { %8 = vsyncpa [#allocation6], 0 }
   0x2   :  { %9 = vsyncpa [#allocation4], 0  ;;  %s616_s9 = smov [#allocation2]   ;;  %s617_s11 = smov [#allocation5]  }
   0x3   :  { %s16_s10 = sshll.u32 %s616_s9, 4  ;;  %s25_s12 = sshll.u32 %s617_s11, 4  ;;  %s17_s10 = int_to_ptr.vmem [resolvable:$true] %s16_s10  ;;  %s639_s12 = int_to_ptr.vmem [resolvable:$true] %s25_s12 }
   0x4   :  { %s544_s15 = scalar_lea.hbm %s703_s0, 128 }
   0x5   :  { %p545_p0 = scmp.ne.s32.totalorder %s703_s0, %s544_s15  ;;  %p548_p1 = scmp.lt.u32.totalorder %s544_s15, %s703_s0 }
   0x7   :  { %p550_p2 = pnand %p548_p1, %p545_p0 }
   0x9   :  { %553 = shalt.err (!%p550_p2)
}
   0xa   :  { %s554_s20 = scalar_lea.vmem %s17_s10, 128  ;;  %p559_p4 = scmp.lt.s32.totalorder %s17_s10, %s17_s10 }
   0xb   :  { %p555_p3 = scmp.ne.s32.totalorder %s17_s10, %s554_s20  ;;  %p560_p5 = scmp.lt.s32.totalorder %s554_s20, %s554_s20 }
   0xd   :  { %p561_p6 = por %p560_p5, %p559_p4 }
   0xf   :  { %p562_p7 = pnand %p561_p6, %p555_p3 }
  0x11   :  { %565 = shalt.err (!%p562_p7)
}
  0x12   :  { %19 = dma.hbm_to_vmem [thread:$0]  %s703_s0, 128, %s17_s10, [#allocation3]  }
  0x13   :  { %s566_s25 = scalar_lea.hbm %s704_s1, 4736 }
  0x14   :  { %p567_p8 = scmp.ne.s32.totalorder %s704_s1, %s566_s25  ;;  %p570_p9 = scmp.lt.u32.totalorder %s566_s25, %s704_s1 }
  0x16   :  { %p572_p10 = pnand %p570_p9, %p567_p8 }
  0x18   :  { %575 = shalt.err (!%p572_p10)
}
  0x19   :  { %s576_s30 = scalar_lea.vmem %s639_s12, 4736  ;;  %p581_p12 = scmp.lt.s32.totalorder %s639_s12, %s639_s12 }
  0x1a   :  { %p577_p11 = scmp.ne.s32.totalorder %s639_s12, %s576_s30  ;;  %p582_p13 = scmp.lt.s32.totalorder %s576_s30, %s576_s30 }
  0x1c   :  { %p583_p0 = por %p582_p13, %p581_p12 }
  0x1e   :  { %p584_p1 = pnand %p583_p0, %p577_p11 }
  0x20   :  { %587 = shalt.err (!%p584_p1)
}
  0x21   :  { %s618_s0 = smov 128   ;;  %s619_s3 = smov 8  }
  0x22   :  { %31 = dma.hbm_to_vmem [thread:$0]  %s704_s1, 4736, %s639_s12, [#allocation6], %s618_s0, %s618_s0, %s619_s3  }
  0x23   :  { %610 = dma.done.wait [#allocation3], 128  }
  0x24   :  { %611 = vsyncadd [#allocation3], 4294967168 }
  0x25   :  { %612 = dma.done.wait [#allocation6], 4736  }
  0x26   :  { %613 = vsyncadd [#allocation6], 4294962560  ;;  %v620_v0 = vmov 0.0|0.0   ;;  %vm621_vm0 = vmmov 0   ;;  %v622_v1 = vmov 0.0   ;;  %v39_v2 = vld [vmem:[#allocation5] sm:$0xff] }
  0x27   :  { %466 = vmatprep.subr.bf16.mxu0 %v620_v0  ;;  %393 = vmatprep.mubr.msk.f32.mxu0 %vm621_vm0, %v622_v1  ;;  %v40_v3 = vld [vmem:[#allocation5 + $0x8] sm:$0xff]  ;;  %v41_v4 = vld [vmem:[#allocation5 + $0x10] sm:$0xff]  ;;  %v42_v6 = vld [vmem:[#allocation5 + $0x18] sm:$0xff]  ;;  %vm48_vm1 = vcmask 261120   ;;  %s623_s1 = smov [#allocation7]   ;;  %vm324_vm2 = vcmask 130048  }
  0x28   :  { %472 = vmatprep.subr.bf16.mxu1 %v620_v0  ;;  %428 = vmatprep.mubr.msk.f32.mxu1 %vm621_vm0, %v622_v1  ;;  %v467_v5 = vpack.c.bf16 %v40_v3, %v39_v2  ;;  %v470_v7 = vpack.c.bf16 %v42_v6, %v41_v4  ;;  %v38_v8 = vld [vmem:[#allocation2] sm:$0xff]  ;;  %v127_v9 = vld [vmem:[#allocation5 + $0x20] sm:$0xff]  ;;  %v128_v10 = vld [vmem:[#allocation5 + $0x28] sm:$0xff]  ;;  %s332_s6 = sshll.u32 %s623_s1, 4  ;;  %s333_s6 = int_to_ptr.vmem [resolvable:$true] %s332_s6 }
  0x29   :  { %v473_v11 = vpack.c.bf16 %v128_v10, %v127_v9  ;;  %v129_v12 = vld [vmem:[#allocation5 + $0x30] sm:$0xff]  ;;  %v130_v13 = vld [vmem:[#allocation5 + $0x38] sm:$0xff]  ;;  %v131_v15 = vld [vmem:[#allocation5 + $0x40] sm:$0xff]  ;;  %s588_s7 = scalar_lea.vmem %s333_s6, 128  ;;  %p593_p3 = scmp.lt.s32.totalorder %s333_s6, %s333_s6 }
  0x2a   :  { %468 = vmatpush3.bf16.msra.mxu0 %v467_v5  ;;  %v476_v14 = vpack.c.bf16 %v130_v13, %v129_v12  ;;  %v132_v16 = vld [vmem:[#allocation5 + $0x48] sm:$0xff]  ;;  %v133_v18 = vld [vmem:[#allocation5 + $0x50] sm:$0xff]  ;;  %v134_v19 = vld [vmem:[#allocation5 + $0x58] sm:$0xff]  ;;  %p589_p2 = scmp.ne.s32.totalorder %s333_s6, %s588_s7  ;;  %p594_p4 = scmp.lt.s32.totalorder %s588_s7, %s588_s7 }
  0x2b   :  { %469 = vmatprep.subr.bf16.mxu0 %v620_v0  ;;  %474 = vmatpush3.bf16.msra.mxu1 %v473_v11  ;;  %v479_v17 = vpack.c.bf16 %v132_v16, %v131_v15  ;;  %v482_v20 = vpack.c.bf16 %v134_v19, %v133_v18  ;;  %v135_v21 = vld [vmem:[#allocation5 + $0x60] sm:$0xff]  ;;  %v136_v22 = vld [vmem:[#allocation5 + $0x68] sm:$0xff]  ;;  %v137_v24 = vld [vmem:[#allocation5 + $0x70] sm:$0xff] }
  0x2c   :  { %475 = vmatprep.subr.bf16.mxu1 %v620_v0  ;;  %v485_v23 = vpack.c.bf16 %v136_v22, %v135_v21  ;;  %v138_v25 = vld [vmem:[#allocation5 + $0x78] sm:$0xff]  ;;  %v139_v27 = vld [vmem:[#allocation5 + $0x80] sm:$0xff]  ;;  %v140_v28 = vld [vmem:[#allocation5 + $0x88] sm:$0xff]  ;;  %p595_p5 = por %p594_p4, %p593_p3 }
  0x2d   :  { %v488_v26 = vpack.c.bf16 %v138_v25, %v137_v24  ;;  %v491_v29 = vpack.c.bf16 %v140_v28, %v139_v27  ;;  %v141_v30 = vld [vmem:[#allocation5 + $0x90] sm:$0xff]  ;;  %v142_v31 = vld [vmem:[#allocation5 + $0x98] sm:$0xff]  ;;  %v342_v33 = vld [vmem:[#allocation5 + $0x120] ss:$0 sm:$0xff] }
  0x2e   :  { %471 = vmatpush3.bf16.msra.mxu0 %v470_v7  ;;  %v494_v32 = vpack.c.bf16 %v142_v31, %v141_v30  ;;  %v223_v42 = vld [vmem:[#allocation5 + $0xa0] sm:$0xff]  ;;  %v224_v43 = vld [vmem:[#allocation5 + $0xa8] sm:$0xff]  ;;  %v225_v45 = vld [vmem:[#allocation5 + $0xb0] sm:$0xff]  ;;  %p596_p6 = pnand %p595_p5, %p589_p2 }
  0x2f   :  { %496 = vmatprep.subr.bf16.mxu0 %v620_v0  ;;  %477 = vmatpush3.bf16.msra.mxu1 %v476_v14  ;;  %v497_v44 = vpack.c.bf16 %v224_v43, %v223_v42  ;;  %v226_v46 = vld [vmem:[#allocation5 + $0xb8] sm:$0xff]  ;;  %v227_v48 = vld [vmem:[#allocation5 + $0xc0] sm:$0xff]  ;;  %v228_v49 = vld [vmem:[#allocation5 + $0xc8] sm:$0xff] }
  0x30   :  { %478 = vmatprep.subr.bf16.mxu1 %v620_v0  ;;  %v500_v47 = vpack.c.bf16 %v226_v46, %v225_v45  ;;  %v503_v50 = vpack.c.bf16 %v228_v49, %v227_v48  ;;  %v229_v51 = vld [vmem:[#allocation5 + $0xd0] sm:$0xff]  ;;  %v230_v52 = vld [vmem:[#allocation5 + $0xd8] sm:$0xff]  ;;  %v231_v54 = vld [vmem:[#allocation5 + $0xe0] sm:$0xff] }
  0x31   :  { %394 = vmatmul.mubr.msk.f32.vlgmr.msra.gmra.mrb[0].mxu0 %vm48_vm1, %v38_v8  ;;  %v506_v53 = vpack.c.bf16 %v230_v52, %v229_v51  ;;  %v232_v55 = vld [vmem:[#allocation5 + $0xe8] sm:$0xff]  ;;  %v233_v57 = vld [vmem:[#allocation5 + $0xf0] sm:$0xff]  ;;  %v234_v58 = vld [vmem:[#allocation5 + $0xf8] sm:$0xff] }
  0x32   :  { %463 = vmatprep.mubr.msk.f32.mxu0 %vm621_vm0, %v622_v1  ;;  %498 = vmatpush3.bf16.msra.mxu0 %v497_v44  ;;  %v509_v56 = vpack.c.bf16 %v232_v55, %v231_v54  ;;  %v512_v59 = vpack.c.bf16 %v234_v58, %v233_v57  ;;  %v235_v60 = vld [vmem:[#allocation5 + $0x100] sm:$0xff]  ;;  %v236_v61 = vld [vmem:[#allocation5 + $0x108] sm:$0xff]  ;;  %v237_v63 = vld [vmem:[#allocation5 + $0x110] sm:$0xff] }
  0x33   :  { %480 = vmatpush3.bf16.msra.mxu1 %v479_v17  ;;  %499 = vmatprep.subr.bf16.mxu0 %v620_v0  ;;  %v515_v62 = vpack.c.bf16 %v236_v61, %v235_v60  ;;  %v238_v1 = vld [vmem:[#allocation5 + $0x118] sm:$0xff]  ;;  %v344_v3 = vld [vmem:[#allocation5 + $0x121] ss:$0 sm:$0xff]  ;;  %v345_v12 = vld [vmem:[#allocation5 + $0x122] ss:$0 sm:$0xff] }
  0x34   :  { %481 = vmatprep.subr.bf16.mxu1 %v620_v0  ;;  %v518_v2 = vpack.c.bf16 %v238_v1, %v237_v63 }
  0x36   :  { %501 = vmatpush3.bf16.msra.mxu0 %v500_v47 }
  0x37   :  { %483 = vmatpush3.bf16.msra.mxu1 %v482_v20  ;;  %502 = vmatprep.subr.bf16.mxu0 %v620_v0 }
  0x38   :  { %484 = vmatprep.subr.bf16.mxu1 %v620_v0 }
  0x3a   :  { %504 = vmatpush3.bf16.msra.mxu0 %v503_v50 }
  0x3b   :  { %486 = vmatpush3.bf16.msra.mxu1 %v485_v23  ;;  %505 = vmatprep.subr.bf16.mxu0 %v620_v0 }
  0x3c   :  { %487 = vmatprep.subr.bf16.mxu1 %v620_v0 }
  0x3e   :  { %507 = vmatpush3.bf16.msra.mxu0 %v506_v53 }
  0x3f   :  { %489 = vmatpush3.bf16.msra.mxu1 %v488_v26  ;;  %508 = vmatprep.subr.bf16.mxu0 %v620_v0 }
  0x40   :  { %490 = vmatprep.subr.bf16.mxu1 %v620_v0 }
  0x42   :  { %510 = vmatpush3.bf16.msra.mxu0 %v509_v56 }
  0x43   :  { %492 = vmatpush3.bf16.msra.mxu1 %v491_v29  ;;  %511 = vmatprep.subr.bf16.mxu0 %v620_v0 }
  0x44   :  { %493 = vmatprep.subr.bf16.mxu1 %v620_v0 }
  0x46   :  { %513 = vmatpush3.bf16.msra.mxu0 %v512_v59 }
  0x47   :  { %495 = vmatpush3.bf16.msra.mxu1 %v494_v32  ;;  %514 = vmatprep.subr.bf16.mxu0 %v620_v0 }
  0x4a   :  { %516 = vmatpush3.bf16.msra.mxu0 %v515_v62 }
  0x4b   :  { %517 = vmatprep.subr.bf16.mxu0 %v620_v0 }
  0x4e   :  { %519 = vmatpush3.bf16.msra.mxu0 %v518_v2 }
 0x104   :  { %v118_v34 = vpop.f32.mrb[0].mxu0 }
 0x105   :  { %v119_v35 = vadd.f32 %v342_v33, %v118_v34  ;;  %v395_v36 = vpop.f32.mrb[1].mxu0 }
 0x107   :  { %v122_v37 = vsub.f32 0.0, %v119_v35 }
 0x109   :  { %v123_v38 = vmul.f32 1.442695, %v122_v37 }
 0x10b   :  { %528 = vpow2.f32 %v123_v38 }
 0x115   :  { %v529_v39 = vpop.eup %528 }
 0x116   :  { %v125_v40 = vadd.f32 1.0, %v529_v39 }
 0x118   :  { %530 = vrcp.f32 %v125_v40 }
 0x122   :  { %v531_v41 = vpop.eup %530 }
 0x123   :  { %429 = vmatmul.mubr.f32.vlgmr.msra.gmra.mrb[0].mxu1 %v531_v41 }
 0x1f6   :  { %v214_v4 = vpop.f32.mrb[0].mxu1 }
 0x1f7   :  { %v215_v5 = vadd.f32 %v344_v3, %v214_v4  ;;  %v430_v6 = vpop.f32.mrb[1].mxu1 }
 0x1f9   :  { %v218_v7 = vsub.f32 0.0, %v215_v5 }
 0x1fb   :  { %v219_v8 = vmul.f32 1.442695, %v218_v7 }
 0x1fd   :  { %532 = vpow2.f32 %v219_v8 }
 0x207   :  { %v533_v9 = vpop.eup %532 }
 0x208   :  { %v221_v10 = vadd.f32 1.0, %v533_v9 }
 0x20a   :  { %534 = vrcp.f32 %v221_v10 }
 0x214   :  { %v535_v11 = vpop.eup %534 }
 0x215   :  { %464 = vmatmul.mubr.f32.vlgmr.msra.gmra.mrb[2].mxu0 %v535_v11 }
 0x2e8   :  { %v310_v13 = vpop.f32.mrb[2].mxu0 }
 0x2e9   :  { %v311_v14 = vadd.f32 %v345_v12, %v310_v13  ;;  %v465_v15 = vpop.f32.mrb[3].mxu0 }
 0x2eb   :  { %v314_v16 = vsub.f32 0.0, %v311_v14 }
 0x2ed   :  { %v315_v17 = vmul.f32 1.442695, %v314_v16 }
 0x2ef   :  { %536 = vpow2.f32 %v315_v17 }
 0x2f9   :  { %v537_v0 = vpop.eup %536 }
 0x2fa   :  { %v317_v18 = vadd.f32 1.0, %v537_v0 }
 0x2fc   :  { %538 = vrcp.f32 %v317_v18 }
 0x306   :  { %v539_v19 = vpop.eup %538 }
 0x307   :  { %v319_v20 = vsub.f32 0.0, %v539_v19 }
 0x309   :  { %v320_v21 = vmul.f32 1.442695, %v319_v20 }
 0x30b   :  { %540 = vpow2.f32 %v320_v21 }
 0x315   :  { %v541_v22 = vpop.eup %540 }
 0x316   :  { %v322_v23 = vadd.f32 1.0, %v541_v22 }
 0x318   :  { %542 = vrcp.f32 %v322_v23 }
 0x322   :  { %v543_v24 = vpop.eup %542 }
 0x323   :  { %325 = vst.msk [vmem:[#allocation7] sm:$0xff] %vm324_vm2, %v543_v24 }
 0x324   :  { %599 = shalt.err (!%p596_p6)
}
 0x325   :  { %s600_s10 = scalar_lea.hbm %s705_s2, 128 }
 0x326   :  { %p601_p7 = scmp.ne.s32.totalorder %s705_s2, %s600_s10  ;;  %p604_p8 = scmp.lt.u32.totalorder %s600_s10, %s705_s2 }
 0x328   :  { %p606_p9 = pnand %p604_p8, %p601_p7 }
 0x32a   :  { %609 = shalt.err (!%p606_p9)
}
 0x32b   :  { %335 = dma.vmem_to_hbm [thread:$0]  %s333_s6, 128, %s705_s2, [#allocation4]  }
 0x32c   :  { %614 = dma.done.wait [#allocation4], 128  }
 0x32d   :  { %615 = vsyncadd [#allocation4], 4294967168 }
 0x32e   :  { %339 = vsyncpa [#allocation3], 1 }
 0x32f   :  { %340 = vsyncpa [#allocation6], 1 }
 0x330   :  { %341 = vsyncpa [#allocation4], 1 }

</bundles_post_ra>
